<compile_context>
chip_gen: v6e
topology: v6e:2x2x1
jax: 0.10.0
libtpu: 0.0.40
codegen_flags: <defaults>
</compile_context>

<pallas_src>
import jax
import jax.numpy as jnp
from jax import lax
from jax.experimental import pallas as pl
from jax.experimental.pallas import tpu as pltpu


def _nsp_kernel(x_ref, w_ref, b_ref, o_ref):
    # x_ref: (TB, H) VMEM   w_ref: (H, 2) VMEM   b_ref: (2,) SMEM   o_ref: (TB, 2)
    # Trailing partial batch tiles feed padded (undefined) rows into the matmul;
    # rows are independent and the masked output write discards the padded rows,
    # so valid outputs are unaffected.
    logits = jnp.dot(x_ref[...], w_ref[...], preferred_element_type=jnp.float32)
    # Bias add from SMEM scalars (avoids a padded (8,128) VMEM tile for 8 bytes).
    # NOTE: hardcodes the 2-class head of NextSentencePrediction.
    col = lax.broadcasted_iota(jnp.int32, logits.shape, 1)
    bias = jnp.where(col == 0, b_ref[0], b_ref[1])
    o_ref[...] = (logits + bias).astype(o_ref.dtype)


def _round_up(x, m):
    return -(-x // m) * m


def _round_down(x, m):
    return (x // m) * m


def _choose_batch_tile(B, H, itemsize, batch_tile, vmem_limit_bytes):
    """Pick the batch tile TB (and the row-alignment granularity)."""
    # Sub-32-bit dtypes pack 2 rows per sublane -> 16-row granularity; f32 -> 8.
    row_align = 8 if itemsize >= 4 else 16
    if B <= row_align:
        # Single tile covering the whole batch; block == full dim is always legal.
        return B, row_align
    batch_tile = max(row_align, _round_down(batch_tile, row_align))
    # Per-grid-step VMEM: double-buffered (TB, H) x tile + double-buffered
    # lane-padded (TB, 128) out tile; reserve the lane-padded (H, 128) W buffers
    # plus ~2 MiB headroom for the compiler.
    reserved = 2 * H * 128 * itemsize + (2 << 20)
    per_row = 2 * (H * itemsize + 128 * itemsize)
    tb_budget = max(
        row_align,
        _round_down(max(vmem_limit_bytes - reserved, 0) // per_row, row_align),
    )
    # Guarantee >= 2 grid tiles so both v7x TensorCores stream HBM; no-op on
    # single-TC v5e/v6e.
    tb_two_tiles = _round_up(pl.cdiv(B, 2), row_align)
    tb = max(row_align, min(batch_tile, tb_budget, tb_two_tiles))
    return tb, row_align


def next_sentence_prediction(x, weight, bias, *,
                             batch_tile=2048,
                             vmem_limit_bytes=32 * 1024 * 1024):
    """
    x      : [batch, seq, hidden]  (f32 or bf16; streamed in its own dtype)
    weight : [2, hidden]           (PyTorch nn.Linear layout)
    bias   : [2]
    returns: [batch, 2] logits (LogSoftmax in __init__ is not applied in
             forward; matched here).
    """
    B, S, H = x.shape
    itemsize = jnp.dtype(x.dtype).itemsize

    # Keep x in its incoming dtype (bf16 halves the HBM read bytes on this
    # bandwidth-bound kernel); the dot accumulates in f32 regardless.
    w_t = weight.T.astype(x.dtype)          # [H, 2]
    b = bias.astype(jnp.float32)            # [2] -> SMEM scalars

    TB, row_align = _choose_batch_tile(B, H, itemsize, batch_tile, vmem_limit_bytes)
    assert TB == B or TB % row_align == 0
    grid = (pl.cdiv(B, TB),)

    # Fused CLS slice: view x as [B, S*H]; a (TB, H) block at column-block 0
    # reads exactly x[:, 0, :] straight from HBM (no wrapper-side copy).
    # Legal when the block's last dim is lane-aligned (H % 128 == 0) or the
    # block covers the full row (S == 1).
    if H % 128 == 0 or S == 1:
        x_in = x.reshape(B, S * H)          # free row-major view, no copy
    else:
        # TODO(synk): replace with memory_space=pl.ANY + in-kernel strided
        # pltpu.make_async_copy of x[:, 0, :] into a double-buffered VMEM
        # scratch to avoid the extra B*H HBM copy for H not divisible by 128.
        x_in = x[:, 0, :]
    x_spec = pl.BlockSpec((TB, H), lambda i: (i, 0))

    cost = pl.CostEstimate(
        flops=4 * B * H,                    # (B,H)@(H,2) multiply-adds
        bytes_accessed=B * H * itemsize + 2 * H * itemsize + B * 2 * itemsize,
        transcendentals=0,
    )

    return pl.pallas_call(
        _nsp_kernel,
        out_shape=jax.ShapeDtypeStruct((B, 2), x.dtype),
        grid_spec=pltpu.PrefetchScalarGridSpec(
            num_scalar_prefetch=0,
            grid=grid,
            in_specs=[
                x_spec,
                pl.BlockSpec((H, 2), lambda i: (0, 0)),
                pl.BlockSpec(memory_space=pltpu.MemorySpace.SMEM),
            ],
            out_specs=pl.BlockSpec((TB, 2), lambda i: (i, 0)),
        ),
        compiler_params=pltpu.CompilerParams(
            # Batch tiles are independent -> shard across the two TensorCores
            # on v7x; harmless on single-TC v5e/v6e.
            dimension_semantics=("parallel",),
            vmem_limit_bytes=vmem_limit_bytes,
        ),
        cost_estimate=cost,
    )(x_in, w_t, b)


if __name__ == "__main__":
    def make_inputs(key, batch, seq, hidden, dtype=jnp.float32):
        kx, kw, kb = jax.random.split(key, 3)
        x = jax.random.normal(kx, (batch, seq, hidden), dtype=jnp.float32).astype(dtype)
        bound = 1.0 / (hidden ** 0.5)       # nn.Linear-style uniform init
        weight = jax.random.uniform(kw, (2, hidden), minval=-bound, maxval=bound,
                                    dtype=jnp.float32)
        bias = jax.random.uniform(kb, (2,), minval=-bound, maxval=bound,
                                  dtype=jnp.float32)
        return x, weight, bias

    # 1) Small shape from the module spec (hidden % 128 != 0 -> wrapper-slice fallback).
    x, w, b = make_inputs(jax.random.PRNGKey(0), batch=2, seq=8, hidden=32)
    out = jax.block_until_ready(next_sentence_prediction(x, w, b))
    ref = x[:, 0, :] @ w.T + b
    assert out.shape == (2, 2)
    assert jnp.allclose(out, ref, atol=1e-5, rtol=1e-5)

    # 2) Lane-aligned hidden -> fused CLS slice, >= 2 batch tiles (megacore path).
    x, w, b = make_inputs(jax.random.PRNGKey(0), batch=32, seq=4, hidden=128)
    out = jax.block_until_ready(next_sentence_prediction(x, w, b, batch_tile=16))
    ref = x[:, 0, :] @ w.T + b
    assert out.shape == (32, 2)
    assert jnp.allclose(out, ref, atol=1e-5, rtol=1e-5)

    # 3) bf16 activations stream in bf16 (16-row sublane packing, partial last tile).
    x, w, b = make_inputs(jax.random.PRNGKey(0), batch=48, seq=2, hidden=128,
                          dtype=jnp.bfloat16)
    out = jax.block_until_ready(next_sentence_prediction(x, w, b))
    ref = (x[:, 0, :].astype(jnp.float32)
           @ w.astype(jnp.bfloat16).astype(jnp.float32).T + b)
    assert out.shape == (48, 2)
    assert jnp.allclose(out.astype(jnp.float32), ref, atol=1e-2, rtol=1e-2)

    print("KERNEL_OK")
</pallas_src>

<mosaic_0001>
module attributes {stable_mosaic.version = 11 : i64} {
  func.func @_nsp_kernel(%arg0: i32, %arg1: memref<2x32xf32, #tpu.memory_space<vmem>>, %arg2: memref<32x2xf32, #tpu.memory_space<vmem>>, %arg3: memref<2xf32, #tpu.memory_space<smem>>, %arg4: memref<2x2xf32, #tpu.memory_space<vmem>>) attributes {dimension_semantics = [#tpu.dimension_semantics<parallel>], iteration_bounds = array<i64: 1>, scalar_prefetch = 0 : i64, scratch_operands = 0 : i64, tpu.core_type = #tpu.core_type<tc>, window_params = [{transform_indices = @transform_0, window_bounds = array<i64: 2, 32>}, {pipeline_mode = #tpu.pipeline_mode<synchronous>, transform_indices = @transform_1, window_bounds = array<i64: 32, 2>}, {transform_indices = @transform_2, window_bounds = array<i64: 2>}, {transform_indices = @transform_3, window_bounds = array<i64: 2, 2>}]} {
    %c0 = arith.constant 0 : index
    %c0_0 = arith.constant 0 : index
    %0 = vector.load %arg1[%c0, %c0_0] : memref<2x32xf32, #tpu.memory_space<vmem>>, vector<2x32xf32>
    %c0_1 = arith.constant 0 : index
    %c0_2 = arith.constant 0 : index
    %1 = vector.load %arg2[%c0_1, %c0_2] : memref<32x2xf32, #tpu.memory_space<vmem>>, vector<32x2xf32>
    %cst = arith.constant dense<0.000000e+00> : vector<2x2xf32>
    %2 = tpu.matmul %0, %1, %cst {dimension_numbers = #tpu.dot_dimension_numbers<[1], [0], [0], [1], [0, 0, 1, 1], [], []>} : vector<2x32xf32>, vector<32x2xf32>, vector<2x2xf32> -> vector<2x2xf32>
    %3 = tpu.iota {dimensions = array<i32: 1>} : vector<2x2xi32>
    %c0_i32 = arith.constant 0 : i32
    %4 = vector.broadcast %c0_i32 : i32 to vector<2x2xi32>
    %5 = arith.cmpi eq, %3, %4 : vector<2x2xi32>
    %c0_3 = arith.constant 0 : index
    %6 = memref.load %arg3[%c0_3] : memref<2xf32, #tpu.memory_space<smem>>
    %c1 = arith.constant 1 : index
    %7 = memref.load %arg3[%c1] : memref<2xf32, #tpu.memory_space<smem>>
    %8 = vector.broadcast %6 : f32 to vector<2x2xf32>
    %9 = vector.broadcast %7 : f32 to vector<2x2xf32>
    %10 = arith.select %5, %8, %9 : vector<2x2xi1>, vector<2x2xf32>
    %11 = arith.addf %2, %10 : vector<2x2xf32>
    %c0_4 = arith.constant 0 : index
    %c0_5 = arith.constant 0 : index
    %12 = vector.load %arg4[%c0_4, %c0_5] : memref<2x2xf32, #tpu.memory_space<vmem>>, vector<2x2xf32>
    tpu.vector_store %arg4[%c0_4, %c0_5], %11 {strides = array<i32>} : memref<2x2xf32, #tpu.memory_space<vmem>>, vector<2x2xf32>,
    return
  }
  func.func @transform_0(%arg0: i32) -> (i32, i32) {
    %c0_i32 = arith.constant 0 : i32
    %c0_i32_0 = arith.constant 0 : i32
    return %arg0, %c0_i32 : i32, i32
  }
  func.func @transform_1(%arg0: i32) -> (i32, i32) {
    %c0_i32 = arith.constant 0 : i32
    %c0_i32_0 = arith.constant 0 : i32
    %c0_i32_1 = arith.constant 0 : i32
    return %c0_i32, %c0_i32_0 : i32, i32
  }
  func.func @transform_2(%arg0: i32) -> i32 {
    %c0_i32 = arith.constant 0 : i32
    %c0_i32_0 = arith.constant 0 : i32
    return %c0_i32 : i32
  }
  func.func @transform_3(%arg0: i32) -> (i32, i32) {
    %c0_i32 = arith.constant 0 : i32
    %c0_i32_0 = arith.constant 0 : i32
    return %arg0, %c0_i32 : i32, i32
  }
}

</mosaic_0001>

<bundles_post_ra>
// kernel: tpu_custom_call.1
= control target key start
LH: loop header
LB: loop body
LE: loop exit
PB: predicated region body
PF: predicated region fallthrough
CT: control target
= control target key end

     0   :  { %8 = vsyncpa [#allocation4], 0  ;;  %s235_s0 = inlined_call_operand.vmem [shape: f32[2,32], index: 0, kind: input, shape index: {}]   ;;  %s236_s1 = inlined_call_operand.vmem [shape: f32[32,2], index: 1, kind: input, shape index: {}]   ;;  %s237_s2 = inlined_call_operand.vmem [shape: f32[2], index: 2, kind: input, shape index: {}]   ;;  %s238_s3 = inlined_call_operand.hbm [shape: f32[2,2], index: 3, kind: output, shape index: {}]  }
   0x1   :  { %9 = vsyncpa [#allocation3], 0  ;;  %s20_s14 = sshll.u32 %s237_s2, 4  ;;  %s21_s14 = int_to_ptr.vmem [resolvable:$true] %s20_s14 }
   0x2   :  { %s154_s15 = scalar_lea.vmem %s21_s14, 16  ;;  %p159_p1 = scmp.lt.s32.totalorder %s21_s14, %s21_s14 }
   0x3   :  { %p155_p0 = scmp.ne.s32.totalorder %s21_s14, %s154_s15  ;;  %p160_p2 = scmp.lt.s32.totalorder %s154_s15, %s154_s15 }
   0x5   :  { %p161_p3 = por %p160_p2, %p159_p1 }
   0x7   :  { %p162_p4 = pnand %p161_p3, %p155_p0 }
   0x9   :  { %165 = shalt.err (!%p162_p4)
}
   0xa   :  { %s190_s16 = smov [#allocation2]  }
   0xb   :  { %23 = dma.vmem_to_smem %s21_s14, 16, %s190_s16, [#allocation4]  }
   0xc   :  { %186 = dma.done.wait [#allocation4], 16  }
   0xd   :  { %187 = vsyncadd [#allocation4], 4294967280 }
   0xe   :  { %27 = sfence }
   0xf   :  { %v32_v0 = vld [vmem:[%s236_s1 + $0x18] sm:$0xff]  ;;  %v191_v1 = vmov 0.0   ;;  %v31_v2 = vld [vmem:[%s236_s1 + $0x10] sm:$0xff]  ;;  %vm192_vm0 = vmmov 0   ;;  %v30_v3 = vld [vmem:[%s236_s1 + $0x8] sm:$0xff]  ;;  %vm41_vm1 = vcmask 261120   ;;  %v33_v6 = vlaneseq }
  0x10   :  { %139 = vmatprep.subr.mxu0 %v191_v1  ;;  %147 = vmatprep.mubr.msk.f32.mxu0 %vm192_vm0, %v191_v1  ;;  %v29_v4 = vld [vmem:[%s236_s1] sm:$0xff]  ;;  %s36_s26 = sld [smem:[#allocation2]]  ;;  %s193_s28 = smov [#allocation5]   ;;  %vm115_vm3 = vcmask 9216  }
  0x11   :  { %140 = vmatpush3.msra.mxu0 %v32_v0  ;;  %v28_v5 = vld [vmem:[%s235_s0] sm:$0x3]  ;;  %s132_s27 = sld [smem:[#allocation2 + $0x1]]  ;;  %v34_v7 = vand.u32 127, %v33_v6  ;;  %s123_s29 = sshll.u32 %s193_s28, 4  ;;  %s124_s29 = int_to_ptr.vmem [resolvable:$true] %s123_s29 }
  0x12   :  { %141 = vmatprep.subr.mxu0 %v191_v1  ;;  %s166_s0 = scalar_lea.vmem %s124_s29, 32  ;;  %p171_p6 = scmp.lt.s32.totalorder %s124_s29, %s124_s29 }
  0x13   :  { %142 = vmatpush3.msra.mxu0 %v31_v2  ;;  %vm35_vm2 = vcmp.eq.s32.totalorder %v34_v7, 0  ;;  %p167_p5 = scmp.ne.s32.totalorder %s124_s29, %s166_s0  ;;  %p172_p7 = scmp.lt.s32.totalorder %s166_s0, %s166_s0 }
  0x14   :  { %143 = vmatprep.subr.mxu0 %v191_v1 }
  0x15   :  { %144 = vmatpush3.msra.mxu0 %v30_v3  ;;  %p173_p8 = por %p172_p7, %p171_p6 }
  0x16   :  { %145 = vmatprep.subr.mxu0 %v191_v1  ;;  %v38_v8 = vstv %s36_s26 }
  0x17   :  { %146 = vmatpush3.msra.mxu0 %v29_v4  ;;  %v39_v9 = vstv %s132_s27  ;;  %p174_p9 = pnand %p173_p8, %p167_p5 }
  0x18   :  { %148 = vmatmul.mubr.msk.f32.vlgmr.msra.gmra.mxu0 %vm41_vm1, %v28_v5  ;;  %v40_v10 = vsel %vm35_vm2, %v38_v8, %v39_v9 }
  0xd8   :  { %v111_v11 = vpop.f32.mrf.mxu0 }
  0xd9   :  { %v112_v12 = vadd.f32 %v111_v11, %v40_v10 }
  0xda   :  { %v149_v13 = vpop.f32.mrf.mxu0 }
  0xdb   :  { %116 = vst.msk [vmem:[#allocation5] sm:$0x3] %vm115_vm3, %v112_v12 }
  0xdc   :  { %177 = shalt.err (!%p174_p9)
}
  0xdd   :  { %126 = dma.vmem_to_hbm [thread:$0]  %s124_s29, 32, %s238_s3, [#allocation3]  }
  0xde   :  { %188 = dma.done.wait [#allocation3], 32  }
  0xdf   :  { %189 = vsyncadd [#allocation3], 4294967264 }
  0xe0   :  { %130 = vsyncpa [#allocation3], 1 }
  0xe1   :  { %131 = vsyncpa [#allocation4], 1 }

</bundles_post_ra>
